<compile_context>
chip_gen: v5e
topology: v5e:2x2
jax: 0.10.0
libtpu: 0.0.40
codegen_flags: <defaults>
</compile_context>

<pallas_src>
import functools

import jax
import jax.numpy as jnp
from jax.experimental import pallas as pl
from jax.experimental.pallas import tpu as pltpu


def _linear_kernel(x_ref, wt_ref, b_ref, o_ref):
    # x_ref:  [tm, tk] bf16
    # wt_ref: [tk, tn] bf16  (pre-transposed weight, so contraction is (1),(0))
    # b_ref:  [1, tn]  f32
    # o_ref:  [tm, tn] f32   (resident across the K grid axis -> accumulator)
    k = pl.program_id(2)

    @pl.when(k == 0)
    def _():
        # Bias added exactly once by seeding the resident output block with it.
        o_ref[...] = jnp.broadcast_to(b_ref[...], o_ref.shape)

    # MXU matmul with f32 accumulation, accumulated straight into the output
    # block (no VMEM scratch, no finalize copy).
    o_ref[...] += jnp.dot(
        x_ref[...], wt_ref[...], preferred_element_type=jnp.float32
    )


def _pick_tile(dim, base, align):
    """Largest legal tile <= base that divides dim (prefer align-multiples)."""
    if dim <= base:
        return dim  # block == full array dim: always legal
    if dim % base == 0:
        return base
    t = (base // align) * align
    while t >= align:
        if dim % t == 0:
            return t
        t -= align
    for t in range(base, 0, -1):  # last resort: any divisor
        if dim % t == 0:
            return t
    return dim


def _chip_config():
    """Generation-aware tile defaults + scoped-VMEM limit."""
    kind = jax.devices()[0].device_kind.lower()
    if "v7" in kind:
        # 64 MiB VMEM/TC: keep double-buffered working set well under ~48 MiB.
        return dict(tm=512, tn=512, tk=1024, vmem_bytes=48 << 20)
    if "v6" in kind:
        # 128 MiB physical VMEM, 256-wide MXU: big tiles, raise scoped limit.
        return dict(tm=512, tn=512, tk=1024, vmem_bytes=100 << 20)
    if "v5" in kind:
        # HBM-BW-starved: big tiles to cut re-streaming; MXU is 128-wide.
        return dict(tm=256, tn=512, tk=1024, vmem_bytes=100 << 20)
    # Unknown chip / interpret: conservative.
    return dict(tm=256, tn=256, tk=512, vmem_bytes=None)


def prepare_linear_params(weight, bias):
    """One-time parameter prep, hoisted out of the per-call forward.

    weight [OUT, IN] f32 -> [IN, OUT] bf16 (single transpose + cast; avoids a
    full extra HBM cast pass every forward and any per-K-step transpose).
    bias   [OUT]     f32 -> [1, OUT] f32.
    """
    w_t = jnp.asarray(weight).T.astype(jnp.bfloat16)
    b2d = jnp.asarray(bias).reshape(1, -1).astype(jnp.float32)
    return w_t, b2d


@functools.partial(jax.jit, static_argnames=("tm", "tn", "tk"))
def data_parallel_bucket_forward(x, w_t, b2d, *, tm=None, tn=None, tk=None):
    """Forward of DataParallelBucket(module=nn.Linear(IN, OUT)).

    x:   [B, IN]   float32 (cast to bf16 in-kernel pipeline, f32 accumulation)
    w_t: [IN, OUT] bfloat16 (from prepare_linear_params, cast/transposed once)
    b2d: [1, OUT]  float32
    returns [B, OUT] float32

    Tile defaults are generation-aware (see _chip_config); explicit tm/tn/tk
    override them (used by the self-test to force a multi-step grid).
    """
    B, IN = x.shape
    IN2, OUT = w_t.shape
    assert IN == IN2

    cfg = _chip_config()
    tm = _pick_tile(B, tm if tm is not None else cfg["tm"], align=8)
    tn = _pick_tile(OUT, tn if tn is not None else cfg["tn"], align=128)
    tk = _pick_tile(IN, tk if tk is not None else cfg["tk"], align=128)

    # Megacore (v7x has 2 TCs): make sure at least one "parallel" axis has
    # >=2 blocks so one core is not left idle.
    if (B // tm) * (OUT // tn) == 1:
        if OUT % 2 == 0 and (OUT // 2) % 128 == 0:
            tn = OUT // 2
        elif B % 2 == 0 and (B // 2) % 8 == 0:
            tm = B // 2

    grid = (B // tm, OUT // tn, IN // tk)

    x_bf = x.astype(jnp.bfloat16)  # per-call activation cast (activations change)

    cost = pl.CostEstimate(
        flops=2 * B * OUT * IN,
        transcendentals=0,
        bytes_accessed=B * IN * 2 + IN * OUT * 2 + OUT * 4 + B * OUT * 4,
    )

    cp_kwargs = dict(dimension_semantics=("parallel", "parallel", "arbitrary"))
    if cfg["vmem_bytes"] is not None:
        cp_kwargs["vmem_limit_bytes"] = cfg["vmem_bytes"]

    return pl.pallas_call(
        _linear_kernel,
        out_shape=jax.ShapeDtypeStruct((B, OUT), jnp.float32),
        grid_spec=pltpu.PrefetchScalarGridSpec(
            num_scalar_prefetch=0,
            grid=grid,
            in_specs=[
                # activations: [tm, tk], walks K on the last grid axis
                pl.BlockSpec((tm, tk), lambda i, j, k: (i, k)),
                # pre-transposed weight [IN, OUT]: [tk, tn] tile
                pl.BlockSpec((tk, tn), lambda i, j, k: (k, j)),
                # bias: [1, tn], depends only on the N grid axis
                pl.BlockSpec((1, tn), lambda i, j, k: (0, j)),
            ],
            # output block constant across K -> resident accumulator, one writeback
            out_specs=pl.BlockSpec((tm, tn), lambda i, j, k: (i, j)),
        ),
        compiler_params=pltpu.CompilerParams(**cp_kwargs),
        cost_estimate=cost,
    )(x_bf, w_t, b2d)


if __name__ == "__main__":
    key = jax.random.PRNGKey(0)
    kx, kw, kb = jax.random.split(key, 3)

    # Small but tile-friendly shapes; the explicit-128-tile run below gives a
    # (2, 2, 4) grid exercising the bias-init / accumulate / writeback paths.
    B, IN, OUT = 256, 512, 256
    x = jax.random.normal(kx, (B, IN), dtype=jnp.float32)
    bound = 1.0 / jnp.sqrt(jnp.float32(IN))
    weight = jax.random.uniform(kw, (OUT, IN), dtype=jnp.float32,
                                minval=-bound, maxval=bound)
    bias = jax.random.uniform(kb, (OUT,), dtype=jnp.float32,
                              minval=-bound, maxval=bound)

    # One-time param prep (hoisted cast + transpose, NOT per forward call).
    w_t, b2d = prepare_linear_params(weight, bias)

    # Reference for the wrapped module's forward with identical bf16 operand
    # quantization and f32 accumulation (DP wrapper adds nothing in forward).
    x_q = x.astype(jnp.bfloat16).astype(jnp.float32)
    w_q = weight.astype(jnp.bfloat16).astype(jnp.float32)
    y_ref = x_q @ w_q.T + bias

    # 1) forced small tiles -> multi-step (2,2,4) grid.
    y_small = data_parallel_bucket_forward(x, w_t, b2d, tm=128, tn=128, tk=128)
    # 2) generation-aware default tiles.
    y_default = data_parallel_bucket_forward(x, w_t, b2d)
    jax.block_until_ready((y_small, y_default))

    for y in (y_small, y_default):
        assert y.shape == (B, OUT)
        assert y.dtype == jnp.float32
        assert jnp.allclose(y, y_ref, atol=2e-3, rtol=2e-3), float(
            jnp.max(jnp.abs(y - y_ref)))

    print("KERNEL_OK")
</pallas_src>

<mosaic_0001>
module attributes {stable_mosaic.version = 11 : i64} {
  func.func @_linear_kernel(%arg0: i32, %arg1: i32, %arg2: i32, %arg3: memref<128x128xbf16, #tpu.memory_space<vmem>>, %arg4: memref<128x128xbf16, #tpu.memory_space<vmem>>, %arg5: memref<1x128xf32, #tpu.memory_space<vmem>>, %arg6: memref<128x128xf32, #tpu.memory_space<vmem>>) attributes {dimension_semantics = [#tpu.dimension_semantics<parallel>, #tpu.dimension_semantics<parallel>, #tpu.dimension_semantics<arbitrary>], iteration_bounds = array<i64: 2, 2, 4>, scalar_prefetch = 0 : i64, scratch_operands = 0 : i64, tpu.core_type = #tpu.core_type<tc>, window_params = [{transform_indices = @transform_0, window_bounds = array<i64: 128, 128>}, {transform_indices = @transform_1, window_bounds = array<i64: 128, 128>}, {transform_indices = @transform_2, window_bounds = array<i64: 1, 128>}, {transform_indices = @transform_3, window_bounds = array<i64: 128, 128>}]} {
    %c0_i32 = arith.constant 0 : i32
    %0 = arith.cmpi eq, %arg2, %c0_i32 : i32
    %1 = arith.extui %0 : i1 to i32
    %c0_i32_0 = arith.constant 0 : i32
    %2 = arith.cmpi ne, %1, %c0_i32_0 : i32
    scf.if %2 {
      %c0_8 = arith.constant 0 : index
      %c0_9 = arith.constant 0 : index
      %9 = vector.load %arg5[%c0_8, %c0_9] : memref<1x128xf32, #tpu.memory_space<vmem>>, vector<1x128xf32>
      %10 = vector.shape_cast %9 : vector<1x128xf32> to vector<1x128xf32>
      %11 = vector.broadcast %10 : vector<1x128xf32> to vector<128x128xf32>
      %c0_10 = arith.constant 0 : index
      %c0_11 = arith.constant 0 : index
      %12 = vector.load %arg6[%c0_10, %c0_11] : memref<128x128xf32, #tpu.memory_space<vmem>>, vector<128x128xf32>
      tpu.vector_store %arg6[%c0_10, %c0_11], %11 {strides = array<i32>} : memref<128x128xf32, #tpu.memory_space<vmem>>, vector<128x128xf32>,
    } else {
    }
    %c0 = arith.constant 0 : index
    %c0_1 = arith.constant 0 : index
    %3 = vector.load %arg6[%c0, %c0_1] : memref<128x128xf32, #tpu.memory_space<vmem>>, vector<128x128xf32>
    %c0_2 = arith.constant 0 : index
    %c0_3 = arith.constant 0 : index
    %4 = vector.load %arg3[%c0_2, %c0_3] : memref<128x128xbf16, #tpu.memory_space<vmem>>, vector<128x128xbf16>
    %c0_4 = arith.constant 0 : index
    %c0_5 = arith.constant 0 : index
    %5 = vector.load %arg4[%c0_4, %c0_5] : memref<128x128xbf16, #tpu.memory_space<vmem>>, vector<128x128xbf16>
    %cst = arith.constant dense<0.000000e+00> : vector<128x128xf32>
    %6 = tpu.matmul %4, %5, %cst {dimension_numbers = #tpu.dot_dimension_numbers<[1], [0], [0], [1], [0, 0, 1, 1], [], []>} : vector<128x128xbf16>, vector<128x128xbf16>, vector<128x128xf32> -> vector<128x128xf32>
    %7 = arith.addf %3, %6 : vector<128x128xf32>
    %c0_6 = arith.constant 0 : index
    %c0_7 = arith.constant 0 : index
    %8 = vector.load %arg6[%c0_6, %c0_7] : memref<128x128xf32, #tpu.memory_space<vmem>>, vector<128x128xf32>
    tpu.vector_store %arg6[%c0_6, %c0_7], %7 {strides = array<i32>} : memref<128x128xf32, #tpu.memory_space<vmem>>, vector<128x128xf32>,
    return
  }
  func.func @transform_0(%arg0: i32, %arg1: i32, %arg2: i32) -> (i32, i32) {
    %c0_i32 = arith.constant 0 : i32
    return %arg0, %arg2 : i32, i32
  }
  func.func @transform_1(%arg0: i32, %arg1: i32, %arg2: i32) -> (i32, i32) {
    %c0_i32 = arith.constant 0 : i32
    return %arg2, %arg1 : i32, i32
  }
  func.func @transform_2(%arg0: i32, %arg1: i32, %arg2: i32) -> (i32, i32) {
    %c0_i32 = arith.constant 0 : i32
    %c0_i32_0 = arith.constant 0 : i32
    return %c0_i32, %arg1 : i32, i32
  }
  func.func @transform_3(%arg0: i32, %arg1: i32, %arg2: i32) -> (i32, i32) {
    %c0_i32 = arith.constant 0 : i32
    return %arg0, %arg1 : i32, i32
  }
}

</mosaic_0001>

<bundles_post_ra>
// kernel: data_parallel_bucket_forward.1
= control target key start
LH: loop header
LB: loop body
LE: loop exit
PB: predicated region body
PF: predicated region fallthrough
CT: control target
= control target key end

     0   :  { %s1584_s0 = inlined_call_operand.vmem [shape: bf16[256,512], index: 0, kind: input, shape index: {}]   ;;  %s1585_s1 = inlined_call_operand.vmem [shape: bf16[512,256], index: 1, kind: input, shape index: {}]   ;;  %s1586_s2 = inlined_call_operand.vmem [shape: f32[1,256], index: 2, kind: input, shape index: {}]   ;;  %s1587_s3 = inlined_call_operand.hbm [shape: f32[256,256], index: 3, kind: output, shape index: {}]  }
   0x1   :  { %1593 = sst [smem:[#allocation13_spill]] %s1584_s0 }
   0x2   :  { %1594 = sst [smem:[#allocation14_spill]] %s1585_s1 }
   0x3   :  { %1595 = sst [smem:[#allocation15_spill]] %s1586_s2 }
   0x4   :  { %1596 = sst [smem:[#allocation16_spill]] %s1587_s3 }
   0x5   :  { %8 = vsyncpa [#allocation5], 0 }
   0x6   :  { %10 = vsyncpa [#allocation5 + $0x1], 0  ;;  %s1248_s12 = smov 0   ;;  %s1250_s13 = smov 0  }
   0x7   :  { %s1252_s14 = smov 0   ;;  %s1254_s15 = smov 0  }
   0x8   :  { %s1256_s16 = smov 0   ;;  %s1258_s17 = smov 0  }
   0x9   :  { %s1260_s18 = smov 0   ;;  %s1262_s19 = smov 0  }
   0xa   :  { %s1264_s20 = smov 0   ;;  %s1266_s21 = smov 0  }
   0xb   :  { %s1268_s22 = smov 0   ;;  %s1270_s23 = smov 0  }
   0xc   :  { %s1272_s24 = smov 0   ;;  %s1274_s25 = smov 0  }
   0xd LB: > { %1597 = sst [smem:[#allocation7_spill]] %s1199_s19  ;;  %s28_s28 = sadd.s32 1, %s1211_s22  ;;  %s1223_s25 = sphi %s1274_s25, %s16_s25   ;;  %s1219_s24 = sphi %s1272_s24, %s1633_s24   ;;  %s1215_s23 = sphi %s1270_s23, %s1632_s23   ;;  %s1211_s22 = sphi %s1268_s22, %s1631_s22   ;;  %s1207_s21 = sphi %s1266_s21, %s1630_s21   ;;  %s1203_s20 = sphi %s1264_s20, %s1629_s20   ;;  %s1199_s19 = sphi %s1262_s19, %s1628_s19   ;;  %s1195_s18 = sphi %s1260_s18, %s1627_s18   ;;  %s1191_s17 = sphi %s1258_s17, %s1626_s17   ;;  %s1187_s16 = sphi %s1256_s16, %s1625_s16   ;;  %s1183_s15 = sphi %s1254_s15, %s1624_s15   ;;  %s1179_s14 = sphi %s1252_s14, %s1623_s14   ;;  %s1175_s13 = sphi %s1250_s13, %s1622_s13   ;;  %s1171_s12 = sphi %s1248_s12, %s1621_s12  }
   0xe   : > { %1598 = sst [smem:[#allocation8_spill]] %s1207_s21  ;;  %s31_s29 = sadd.s32 1, %s1215_s23 }
   0xf   : > { %1599 = sst [smem:[#allocation9_spill]] %s1219_s24  ;;  %p29_p0 = scmp.ge.s32.totalorder %s28_s28, 4 }
  0x10   : > { %s35_s30 = sadd.s32 1, %s1219_s24  ;;  %s44_s4 = sadd.s32 1, %s1195_s18 }
  0x11   : > { %p51_p1 = scmp.ne.s32.totalorder %s1195_s18, %s1191_s17  ;;  %s1635_s28 = smov (%p29_p0, %s28_s28), 0 }
  0x12   : > { %1600 = sst [smem:[#allocation10_spill]] %s1635_s28  ;;  %s1637_s29 = smov (!%p29_p0, %s31_s29), %s1215_s23 }
  0x13   : > { %s40_s5 = ssub.s32 %s1211_s22, %s1635_s28  ;;  %p52_p2 = scmp.eq.s32.totalorder %s1223_s25, 0 }
  0x14   : > { %p33_p3 = scmp.ge.s32.totalorder %s1637_s29, 2  ;;  %s72_s6 = sadd.s32 1, %s1187_s16 }
  0x15   : > { %p1333_p4 = por %p52_p2, %p51_p1  ;;  %p79_p5 = scmp.ne.s32.totalorder %s1187_s16, %s1183_s15 }
  0x16   : > { %s1639_s29 = smov (%p33_p3, %s1637_s29), 0  ;;  %s1641_s30 = smov (!%p33_p3, %s35_s30), %s1219_s24 }
  0x17   : > { %1602 = sst [smem:[#allocation11_spill]] %s1639_s29  ;;  %s68_s8 = ssub.s32 %s1215_s23, %s1639_s29 }
  0x18   : > { %p1344_p6 = por %p79_p5, %p52_p2  ;;  %p37_p7 = scmp.ge.s32.totalorder %s1641_s30, 2 }
  0x19   : > { %s69_s10 = sor.u32 %s68_s8, %s40_s5  ;;  %s126_s11 = sadd.s32 1, %s1179_s14 }
  0x1a   : > { %p70_p8 = scmp.eq.s32.totalorder %s69_s10, 0  ;;  %s1643_s30 = smov (%p37_p7, %s1641_s30), 0 }
  0x1b   : > { %1604 = sst [smem:[#allocation12_spill]] %s1643_s30  ;;  %s39_s26 = ssub.s32 %s1219_s24, %s1643_s30 }
  0x1c   : > { %s1352_s27 = scalar_select %p70_p8, %s1187_s16, %s72_s6  }
  0x1d   : > { %p136_p9 = scmp.ne.s32.totalorder %s1179_s14, %s1175_s13  ;;  %s41_s28 = sor.u32 %s40_s5, %s39_s26 }
  0x1e   : > { %s123_s29 = sor.u32 %s68_s8, %s39_s26  ;;  %p42_p10 = scmp.eq.s32.totalorder %s41_s28, 0 }
  0x1f   : > { %p124_p11 = scmp.eq.s32.totalorder %s123_s29, 0  ;;  %s1605_s3 = sadd.s32 4294967295, %s1223_s25  }
  0x20   : > { %p137_p12 = scmp.eq.s32.totalorder %s1605_s3, 15  ;;  %p142_p13 = scmp.ne.s32.totalorder %s1175_s13, %s1171_s12 }
  0x21   : > { %s1363_s21 = scalar_select %p42_p10, %s1195_s18, %s44_s4  }
  0x22   : > { %s1366_s19 = scalar_select %p124_p11, %s1179_s14, %s126_s11  }
  0x23   : > { %p1368_p0 = por %p137_p12, %p136_p9  ;;  %s1607_s2 = sadd.s32 4294967294, %s1223_s25  }
  0x24   : > { %p143_p1 = scmp.eq.s32.totalorder %s1607_s2, 15  ;;  %p831_p3 = scmp.ge.s32.totalorder %s1223_s25, 16 }
  0x26   : > { %p1374_p2 = por %p143_p1, %p142_p13  ;;  %159 = sbr.rel (%p831_p3) target bundleno = 95 (0x5f), region = 16 }
  0x2b   : > { %162 = sbr.rel (!%p1333_p4) target bundleno = 69 (0x45), region = 20  ;;  %s164_s3 = sand.u32 (%p1333_p4), 1, %s1195_s18  }
  0x2c   : > { %s915_s26 = sshll.u32 (%p1333_p4), %s1219_s24, 6  ;;  %s832_s28 = sshll.u32 (%p1333_p4), %s164_s3, 6 }
  0x2d   : > { %s169_s29 = sadd.s32 (%p1333_p4), %s1211_s22, %s915_s26  ;;  %s1609_s0 = sld [smem:[#allocation13_spill]] (%p1333_p4) }
  0x2e   : > { %s835_s4 = sshll.u32 (%p1333_p4), %s169_s29, 2  ;;  %s166_s7 = scalar_lea.vmem (%p1333_p4), [#allocation2], %s832_s28 }
  0x33   : > { %s1387_s8 = scalar_lea.vmem %s1609_s0, %s835_s4 }
  0x34   : > { %v188_v0 = vld [vmem:[%s1387_s8] sm:$0xf]  ;;  %v190_v1 = vld [vmem:[%s1387_s8 + $0x10] sm:$0xf] }
  0x35   : > { %v192_v2 = vld [vmem:[%s1387_s8 + $0x20] sm:$0xf]  ;;  %189 = vst [vmem:[%s166_s7] sm:$0xf] %v188_v0  ;;  %v194_v3 = vld [vmem:[%s1387_s8 + $0x30] sm:$0xf] }
  0x36   : > { %191 = vst [vmem:[%s166_s7 + $0x4] sm:$0xf] %v190_v1  ;;  %v196_v4 = vld [vmem:[%s1387_s8 + $0x40] sm:$0xf]  ;;  %v198_v5 = vld [vmem:[%s1387_s8 + $0x50] sm:$0xf] }
  0x37   : > { %193 = vst [vmem:[%s166_s7 + $0x8] sm:$0xf] %v192_v2  ;;  %v200_v6 = vld [vmem:[%s1387_s8 + $0x60] sm:$0xf]  ;;  %v202_v7 = vld [vmem:[%s1387_s8 + $0x70] sm:$0xf] }
  0x38   : > { %195 = vst [vmem:[%s166_s7 + $0xc] sm:$0xf] %v194_v3  ;;  %v204_v8 = vld [vmem:[%s1387_s8 + $0x80] sm:$0xf]  ;;  %v206_v9 = vld [vmem:[%s1387_s8 + $0x90] sm:$0xf] }
  0x39   : > { %197 = vst [vmem:[%s166_s7 + $0x10] sm:$0xf] %v196_v4  ;;  %v208_v10 = vld [vmem:[%s1387_s8 + $0xa0] sm:$0xf]  ;;  %v210_v11 = vld [vmem:[%s1387_s8 + $0xb0] sm:$0xf] }
  0x3a   : > { %199 = vst [vmem:[%s166_s7 + $0x14] sm:$0xf] %v198_v5  ;;  %v212_v12 = vld [vmem:[%s1387_s8 + $0xc0] sm:$0xf]  ;;  %v214_v13 = vld [vmem:[%s1387_s8 + $0xd0] sm:$0xf] }
  0x3b   : > { %201 = vst [vmem:[%s166_s7 + $0x18] sm:$0xf] %v200_v6  ;;  %v216_v14 = vld [vmem:[%s1387_s8 + $0xe0] sm:$0xf]  ;;  %v218_v15 = vld [vmem:[%s1387_s8 + $0xf0] sm:$0xf] }
  0x3c   : > { %203 = vst [vmem:[%s166_s7 + $0x1c] sm:$0xf] %v202_v7 }
  0x3d   : > { %205 = vst [vmem:[%s166_s7 + $0x20] sm:$0xf] %v204_v8 }
  0x3e   : > { %207 = vst [vmem:[%s166_s7 + $0x24] sm:$0xf] %v206_v9 }
  0x3f   : > { %209 = vst [vmem:[%s166_s7 + $0x28] sm:$0xf] %v208_v10 }
  0x40   : > { %211 = vst [vmem:[%s166_s7 + $0x2c] sm:$0xf] %v210_v11 }
  0x41   : > { %213 = vst [vmem:[%s166_s7 + $0x30] sm:$0xf] %v212_v12 }
  0x42   : > { %215 = vst [vmem:[%s166_s7 + $0x34] sm:$0xf] %v214_v13 }
  0x43   : > { %217 = vst [vmem:[%s166_s7 + $0x38] sm:$0xf] %v216_v14 }
  0x44   : > { %219 = vst [vmem:[%s166_s7 + $0x3c] sm:$0xf] %v218_v15 }
  0x45 PF: > { %275 = sbr.rel (!%p1344_p6) target bundleno = 95 (0x5f), region = 61  ;;  %s277_s11 = sand.u32 (%p1344_p6), 1, %s1187_s16  }
  0x46   : > { %s916_s3 = sshll.u32 (%p1344_p6), %s1211_s22, 5  ;;  %s836_s26 = sshll.u32 (%p1344_p6), %s277_s11, 6 }
  0x47   : > { %s282_s28 = sadd.s32 (%p1344_p6), %s1215_s23, %s916_s3  ;;  %s1610_s1 = sld [smem:[#allocation14_spill]] (%p1344_p6) }
  0x48   : > { %s839_s29 = sshll.u32 (%p1344_p6), %s282_s28, 2  ;;  %s279_s9 = scalar_lea.vmem (%p1344_p6), [#allocation3], %s836_s26 }
  0x4d   : > { %s1413_s2 = scalar_lea.vmem %s1610_s1, %s839_s29 }
  0x4e   : > { %v301_v16 = vld [vmem:[%s1413_s2] sm:$0xf]  ;;  %v303_v17 = vld [vmem:[%s1413_s2 + $0x8] sm:$0xf]  ;;  %v305_v18 = vld [vmem:[%s1413_s2 + $0x10] sm:$0xf] }
  0x4f   : > { %302 = vst [vmem:[%s279_s9] sm:$0xf] %v301_v16  ;;  %v307_v19 = vld [vmem:[%s1413_s2 + $0x18] sm:$0xf]  ;;  %v309_v20 = vld [vmem:[%s1413_s2 + $0x20] sm:$0xf] }
  0x50   : > { %304 = vst [vmem:[%s279_s9 + $0x4] sm:$0xf] %v303_v17  ;;  %v311_v21 = vld [vmem:[%s1413_s2 + $0x28] sm:$0xf]  ;;  %v313_v22 = vld [vmem:[%s1413_s2 + $0x30] sm:$0xf] }
  0x51   : > { %306 = vst [vmem:[%s279_s9 + $0x8] sm:$0xf] %v305_v18  ;;  %v315_v23 = vld [vmem:[%s1413_s2 + $0x38] sm:$0xf]  ;;  %v317_v24 = vld [vmem:[%s1413_s2 + $0x40] sm:$0xf] }
  0x52   : > { %308 = vst [vmem:[%s279_s9 + $0xc] sm:$0xf] %v307_v19  ;;  %v319_v25 = vld [vmem:[%s1413_s2 + $0x48] sm:$0xf]  ;;  %v321_v26 = vld [vmem:[%s1413_s2 + $0x50] sm:$0xf] }
  0x53   : > { %310 = vst [vmem:[%s279_s9 + $0x10] sm:$0xf] %v309_v20  ;;  %v323_v27 = vld [vmem:[%s1413_s2 + $0x58] sm:$0xf]  ;;  %v325_v28 = vld [vmem:[%s1413_s2 + $0x60] sm:$0xf] }
  0x54   : > { %312 = vst [vmem:[%s279_s9 + $0x14] sm:$0xf] %v311_v21  ;;  %v327_v29 = vld [vmem:[%s1413_s2 + $0x68] sm:$0xf]  ;;  %v329_v30 = vld [vmem:[%s1413_s2 + $0x70] sm:$0xf] }
  0x55   : > { %314 = vst [vmem:[%s279_s9 + $0x18] sm:$0xf] %v313_v22  ;;  %v331_v31 = vld [vmem:[%s1413_s2 + $0x78] sm:$0xf] }
  0x56   : > { %316 = vst [vmem:[%s279_s9 + $0x1c] sm:$0xf] %v315_v23 }
  0x57   : > { %318 = vst [vmem:[%s279_s9 + $0x20] sm:$0xf] %v317_v24 }
  0x58   : > { %320 = vst [vmem:[%s279_s9 + $0x24] sm:$0xf] %v319_v25 }
  0x59   : > { %322 = vst [vmem:[%s279_s9 + $0x28] sm:$0xf] %v321_v26 }
  0x5a   : > { %324 = vst [vmem:[%s279_s9 + $0x2c] sm:$0xf] %v323_v27 }
  0x5b   : > { %326 = vst [vmem:[%s279_s9 + $0x30] sm:$0xf] %v325_v28 }
  0x5c   : > { %328 = vst [vmem:[%s279_s9 + $0x34] sm:$0xf] %v327_v29 }
  0x5d   : > { %330 = vst [vmem:[%s279_s9 + $0x38] sm:$0xf] %v329_v30 }
  0x5e   : > { %332 = vst [vmem:[%s279_s9 + $0x3c] sm:$0xf] %v331_v31 }
  0x5f PF: > { %p840_p4 = scmp.ge.s32.totalorder %s1223_s25, 1  ;;  %p393_p5 = scmp.lt.s32.totalorder %s1223_s25, 17 }
  0x61   : > { %p394_p6 = pnand %p840_p4, %p393_p5 }
  0x62   : > { %s400_s8 = sand.u32 (!%p394_p6), 1, %s1191_s17   ;;  %s407_s7 = sand.u32 (!%p394_p6), 1, %s1183_s15  }
  0x63   : > { %397 = sbr.rel (%p394_p6) target bundleno = 332 (0x14c), region = 106  ;;  %s841_s11 = sshll.u32 (!%p394_p6), %s400_s8, 6 }
  0x64   : > { %s842_s3 = sshll.u32 (!%p394_p6), %s407_s7, 6  ;;  %s434_s26 = sand.u32 (!%p394_p6), 1, %s1175_s13  }
  0x65   : > { %p439_p7 = scmp.lt.s32.totalorder (!%p394_p6), %s1203_s20, 1  ;;  %s843_s28 = sshll.u32 (!%p394_p6), %s434_s26, 7 }
  0x66   : > { %s1611_s2 = sld [smem:[#allocation15_spill]] (!%p394_p6)  ;;  %s1443_s0 = scalar_lea.vmem (!%p394_p6), [#allocation2], %s841_s11 }
  0x67   : > { %s1445_s1 = scalar_lea.vmem (!%p394_p6), [#allocation3], %s842_s3  ;;  %s1447_s30 = scalar_lea.vmem (!%p394_p6), [#allocation4], %s843_s28 }
  0x68   : > { %s440_s29 = scalar_select %p439_p7, %s1203_s20, 1 }
  0x69   : > { %s1612_s24 = sld [smem:[#allocation7_spill]] }
  0x6c   : > { %s441_s9 = scalar_lea.vmem %s1611_s2, %s440_s29 }
  0x6f   : > { %p844_p8 = scmp.ne.s32.totalorder %s1612_s24, 0 }
  0x71   : > { %446 = sbr.rel (%p844_p8) target bundleno = 135 (0x87), region = 118 }
  0x76   : > { %v1080_v32 = vld [vmem:[%s441_s9] ss:$0 sm:$0xff] }
  0x77   : > { %451 = vst [vmem:[%s1447_s30] sm:$0xff] %v1080_v32 }
  0x78   : > { %452 = vst [vmem:[%s1447_s30 + $0x8] sm:$0xff] %v1080_v32 }
  0x79   : > { %453 = vst [vmem:[%s1447_s30 + $0x10] sm:$0xff] %v1080_v32 }
  0x7a   : > { %454 = vst [vmem:[%s1447_s30 + $0x18] sm:$0xff] %v1080_v32 }
  0x7b   : > { %455 = vst [vmem:[%s1447_s30 + $0x20] sm:$0xff] %v1080_v32 }
  0x7c   : > { %456 = vst [vmem:[%s1447_s30 + $0x28] sm:$0xff] %v1080_v32 }
  0x7d   : > { %457 = vst [vmem:[%s1447_s30 + $0x30] sm:$0xff] %v1080_v32 }
  0x7e   : > { %458 = vst [vmem:[%s1447_s30 + $0x38] sm:$0xff] %v1080_v32 }
  0x7f   : > { %459 = vst [vmem:[%s1447_s30 + $0x40] sm:$0xff] %v1080_v32 }
  0x80   : > { %460 = vst [vmem:[%s1447_s30 + $0x48] sm:$0xff] %v1080_v32 }
  0x81   : > { %461 = vst [vmem:[%s1447_s30 + $0x50] sm:$0xff] %v1080_v32 }
  0x82   : > { %462 = vst [vmem:[%s1447_s30 + $0x58] sm:$0xff] %v1080_v32 }
  0x83   : > { %463 = vst [vmem:[%s1447_s30 + $0x60] sm:$0xff] %v1080_v32 }
  0x84   : > { %464 = vst [vmem:[%s1447_s30 + $0x68] sm:$0xff] %v1080_v32 }
  0x85   : > { %465 = vst [vmem:[%s1447_s30 + $0x70] sm:$0xff] %v1080_v32 }
  0x86   : > { %466 = vst [vmem:[%s1447_s30 + $0x78] sm:$0xff] %v1080_v32 }
  0x87 PF: > { %v932_v33 = vld [vmem:[%s1445_s1 + $0x38] sm:$0xff]  ;;  %v931_v34 = vld [vmem:[%s1445_s1 + $0x30] sm:$0xff]  ;;  %v930_v35 = vld [vmem:[%s1445_s1 + $0x28] sm:$0xff]  ;;  %s1614_s8 = sld [smem:[#allocation16_spill]]  ;;  %s707_s11 = sshll.u32 %s1447_s30, 4  ;;  %s708_s11 = int_to_ptr.vmem [resolvable:$true] %s707_s11 }
  0x88   : > { %611 = vmatpush.bf16.msra.mxu0 %v932_v33  ;;  %934 = vmatpush.bf16.msra.mxu1 %v932_v33  ;;  %v929_v36 = vld [vmem:[%s1445_s1 + $0x20] sm:$0xff]  ;;  %v928_v37 = vld [vmem:[%s1445_s1 + $0x18] sm:$0xff]  ;;  %v927_v38 = vld [vmem:[%s1445_s1 + $0x10] sm:$0xff]  ;;  %s693_s28 = scalar_lea.sflag [#allocation5], %s434_s26 }
  0x89   : > { %935 = vmatpush.bf16.msra.mxu2 %v932_v33  ;;  %936 = vmatpush.bf16.msra.mxu3 %v932_v33  ;;  %v926_v39 = vld [vmem:[%s1445_s1 + $0x8] sm:$0xff]  ;;  %v925_v40 = vld [vmem:[%s1445_s1] sm:$0xff]  ;;  %v919_v42 = vld [vmem:[%s1443_s0 + $0x10] sm:$0xff] }
  0x8a   : > { %v917_v41 = vld [vmem:[%s1443_s0] sm:$0xff]  ;;  %v923_v44 = vld [vmem:[%s1443_s0 + $0x30] sm:$0xff]  ;;  %v918_v45 = vld [vmem:[%s1443_s0 + $0x8] sm:$0xff] }
  0x8b   : > { %v921_v43 = vld [vmem:[%s1443_s0 + $0x20] sm:$0xff]  ;;  %v920_v46 = vld [vmem:[%s1443_s0 + $0x18] sm:$0xff]  ;;  %v922_v47 = vld [vmem:[%s1443_s0 + $0x28] sm:$0xff] }
  0x8c   : > { %612 = vmatpush.bf16.msra.mxu0 %v931_v34  ;;  %937 = vmatpush.bf16.msra.mxu1 %v931_v34  ;;  %v924_v48 = vld [vmem:[%s1443_s0 + $0x38] sm:$0xff]  ;;  %v467_v49 = vld [vmem:[%s1447_s30] sm:$0xff]  ;;  %v468_v57 = vld [vmem:[%s1447_s30 + $0x8] sm:$0xff]  ;;  %s1613_s0 = sld [smem:[#allocation8_spill]] }
  0x8d   : > { %938 = vmatpush.bf16.msra.mxu2 %v931_v34  ;;  %939 = vmatpush.bf16.msra.mxu3 %v931_v34  ;;  %v471_v50 = vld [vmem:[%s1447_s30 + $0x20] sm:$0xff]  ;;  %v472_v58 = vld [vmem:[%s1447_s30 + $0x28] sm:$0xff]  ;;  %v469_v5 = vld [vmem:[%s1447_s30 + $0x10] sm:$0xff]  ;;  %s1101_s9 = scalar_lea.hbm %s1614_s8, 512 }
  0x8e   : > { %v475_v55 = vld [vmem:[%s1447_s30 + $0x40] sm:$0xff]  ;;  %v476_v3 = vld [vmem:[%s1447_s30 + $0x48] sm:$0xff]  ;;  %v473_v6 = vld [vmem:[%s1447_s30 + $0x30] sm:$0xff] }
  0x8f   : > { %v479_v56 = vld [vmem:[%s1447_s30 + $0x60] sm:$0xff]  ;;  %v480_v4 = vld [vmem:[%s1447_s30 + $0x68] sm:$0xff]  ;;  %v477_v15 = vld [vmem:[%s1447_s30 + $0x50] sm:$0xff] }
  0x90   : > { %613 = vmatpush.bf16.msra.mxu0 %v930_v35  ;;  %940 = vmatpush.bf16.msra.mxu1 %v930_v35  ;;  %v481_v16 = vld [vmem:[%s1447_s30 + $0x70] sm:$0xff]  ;;  %v470_v17 = vld [vmem:[%s1447_s30 + $0x18] sm:$0xff] }
  0x91   : > { %941 = vmatpush.bf16.msra.mxu2 %v930_v35  ;;  %942 = vmatpush.bf16.msra.mxu3 %v930_v35  ;;  %v474_v18 = vld [vmem:[%s1447_s30 + $0x38] sm:$0xff] }
  0x92   : > { %s933_s1 = sshll.u32 %s1613_s0, 5  ;;  %v478_v27 = vld [vmem:[%s1447_s30 + $0x58] sm:$0xff] }
  0x93   : > { %s704_s15 = sadd.s32 %s1203_s20, %s933_s1  ;;  %v482_v28 = vld [vmem:[%s1447_s30 + $0x78] sm:$0xff] }
  0x94   : > { %614 = vmatpush.bf16.msra.mxu0 %v929_v36  ;;  %943 = vmatpush.bf16.msra.mxu1 %v929_v36  ;;  %s912_s17 = sshll.u32 %s704_s15, 3 }
  0x95   : > { %944 = vmatpush.bf16.msra.mxu2 %v929_v36  ;;  %945 = vmatpush.bf16.msra.mxu3 %v929_v36  ;;  %s706_s7 = scalar_lea.hbm %s1614_s8, %s912_s17 }
  0x96   : > { %s709_s3 = sshll.u32 %s706_s7, 4  ;;  %s710_s3 = int_to_ptr.hbm [resolvable:$true] %s709_s3 }
  0x97   : > { %s1095_s29 = sshra.s32 %s710_s3, 4  ;;  %s1096_s29 = int_to_ptr.hbm [resolvable:$true] %s1095_s29 }
  0x98   : > { %615 = vmatpush.bf16.msra.mxu0 %v928_v37  ;;  %946 = vmatpush.bf16.msra.mxu1 %v928_v37  ;;  %s1097_s4 = scalar_lea.hbm %s1096_s29, 128  ;;  %p1102_p12 = scmp.lt.s32.totalorder %s1096_s29, %s1614_s8 }
  0x99   : > { %947 = vmatpush.bf16.msra.mxu2 %v928_v37  ;;  %948 = vmatpush.bf16.msra.mxu3 %v928_v37  ;;  %p1098_p9 = scmp.ne.s32.totalorder %s1096_s29, %s1097_s4  ;;  %p1103_p13 = scmp.lt.s32.totalorder %s1101_s9, %s1097_s4 }
  0x9b   : > { %p1099_p10 = pnand %p1098_p9, %p1368_p0  ;;  %p1104_p1 = por %p1103_p13, %p1102_p12 }
  0x9c   : > { %616 = vmatpush.bf16.msra.mxu0 %v927_v38  ;;  %949 = vmatpush.bf16.msra.mxu1 %v927_v38 }
  0x9d   : > { %950 = vmatpush.bf16.msra.mxu2 %v927_v38  ;;  %951 = vmatpush.bf16.msra.mxu3 %v927_v38  ;;  %p1100_p11 = pneg %p1099_p10 }
  0x9f   : > { %p1105_p3 = pnand %p1104_p1, %p1100_p11 }
  0xa0   : > { %617 = vmatpush.bf16.msra.mxu0 %v926_v39  ;;  %952 = vmatpush.bf16.msra.mxu1 %v926_v39 }
  0xa1   : > { %953 = vmatpush.bf16.msra.mxu2 %v926_v39  ;;  %954 = vmatpush.bf16.msra.mxu3 %v926_v39 }
  0xa4   : > { %618 = vmatpush.bf16.msra.mxu0 %v925_v40  ;;  %955 = vmatpush.bf16.msra.mxu1 %v925_v40 }
  0xa5   : > { %956 = vmatpush.bf16.msra.mxu2 %v925_v40  ;;  %957 = vmatpush.bf16.msra.mxu3 %v925_v40 }
  0xa7   : > { %619 = vmatmul.bf16.vlgmr.msra.gmra.mxu0 %v917_v41  ;;  %629 = vmatmul.bf16.vlgmr.msra.gmra.mxu1 %v919_v42 }
  0xa8   : > { %639 = vmatmul.bf16.vlgmr.msra.gmra.mxu2 %v921_v43  ;;  %649 = vmatmul.bf16.vlgmr.msra.gmra.mxu3 %v923_v44 }
  0xb7   : > { %624 = vmatmul.bf16.gmra.mxu0 %v918_v45  ;;  %634 = vmatmul.bf16.gmra.mxu1 %v920_v46 }
  0xb8   : > { %644 = vmatmul.bf16.gmra.mxu2 %v922_v47  ;;  %654 = vmatmul.bf16.gmra.mxu3 %v924_v48 }
 0x124   : > { %v620_v51 = vpop.f32.mrf.mxu0  ;;  %v630_v52 = vpop.f32.mrf.mxu1 }
 0x125   : > { %v660_v53 = vadd.f32 %v620_v51, %v467_v49  ;;  %v664_v54 = vadd.f32 %v630_v52, %v471_v50 }
 0x127   : > { %676 = vst [vmem:[%s1447_s30] sm:$0xff] %v660_v53 }
 0x128   : > { %680 = vst [vmem:[%s1447_s30 + $0x20] sm:$0xff] %v664_v54 }
 0x12b   : > { %v640_v59 = vpop.f32.mrf.mxu2  ;;  %v650_v60 = vpop.f32.mrf.mxu3 }
 0x12c   : > { %v668_v61 = vadd.f32 %v640_v59, %v475_v55  ;;  %v672_v62 = vadd.f32 %v650_v60, %v479_v56  ;;  %v622_v63 = vpop.f32.mrf.mxu0  ;;  %v632_v0 = vpop.f32.mrf.mxu1 }
 0x12d   : > { %v661_v1 = vadd.f32 %v622_v63, %v468_v57  ;;  %v665_v2 = vadd.f32 %v632_v0, %v472_v58 }
 0x12e   : > { %684 = vst [vmem:[%s1447_s30 + $0x40] sm:$0xff] %v668_v61 }
 0x12f   : > { %688 = vst [vmem:[%s1447_s30 + $0x60] sm:$0xff] %v672_v62 }
 0x130   : > { %677 = vst [vmem:[%s1447_s30 + $0x8] sm:$0xff] %v661_v1 }
 0x131   : > { %681 = vst [vmem:[%s1447_s30 + $0x28] sm:$0xff] %v665_v2 }
 0x133   : > { %v642_v7 = vpop.f32.mrf.mxu2  ;;  %v652_v8 = vpop.f32.mrf.mxu3 }
 0x134   : > { %v669_v9 = vadd.f32 %v642_v7, %v476_v3  ;;  %v673_v10 = vadd.f32 %v652_v8, %v480_v4  ;;  %v625_v11 = vpop.f32.mrf.mxu0  ;;  %v635_v12 = vpop.f32.mrf.mxu1 }
 0x135   : > { %v662_v13 = vadd.f32 %v625_v11, %v469_v5  ;;  %v666_v14 = vadd.f32 %v635_v12, %v473_v6 }
 0x136   : > { %685 = vst [vmem:[%s1447_s30 + $0x48] sm:$0xff] %v669_v9 }
 0x137   : > { %689 = vst [vmem:[%s1447_s30 + $0x68] sm:$0xff] %v673_v10 }
 0x138   : > { %678 = vst [vmem:[%s1447_s30 + $0x10] sm:$0xff] %v662_v13 }
 0x139   : > { %682 = vst [vmem:[%s1447_s30 + $0x30] sm:$0xff] %v666_v14 }
 0x13b   : > { %v645_v19 = vpop.f32.mrf.mxu2  ;;  %v655_v20 = vpop.f32.mrf.mxu3 }
 0x13c   : > { %v670_v21 = vadd.f32 %v645_v19, %v477_v15  ;;  %v674_v22 = vadd.f32 %v655_v20, %v481_v16  ;;  %v627_v23 = vpop.f32.mrf.mxu0  ;;  %v637_v24 = vpop.f32.mrf.mxu1 }
 0x13d   : > { %v663_v25 = vadd.f32 %v627_v23, %v470_v17  ;;  %v667_v26 = vadd.f32 %v637_v24, %v474_v18 }
 0x13e   : > { %686 = vst [vmem:[%s1447_s30 + $0x50] sm:$0xff] %v670_v21 }
 0x13f   : > { %690 = vst [vmem:[%s1447_s30 + $0x70] sm:$0xff] %v674_v22 }
 0x140   : > { %679 = vst [vmem:[%s1447_s30 + $0x18] sm:$0xff] %v663_v25 }
 0x141   : > { %683 = vst [vmem:[%s1447_s30 + $0x38] sm:$0xff] %v667_v26 }
 0x143   : > { %v647_v29 = vpop.f32.mrf.mxu2  ;;  %v657_v30 = vpop.f32.mrf.mxu3 }
 0x144   : > { %v671_v31 = vadd.f32 %v647_v29, %v478_v27  ;;  %v675_v32 = vadd.f32 %v657_v30, %v482_v28 }
 0x146   : > { %687 = vst [vmem:[%s1447_s30 + $0x58] sm:$0xff] %v671_v31 }
 0x147   : > { %691 = vst [vmem:[%s1447_s30 + $0x78] sm:$0xff] %v675_v32 }
 0x148   : > { %1108 = shalt.err (!%p1105_p3)
}
 0x149   : > { %s1225_s30 = smov 128   ;;  %s1226_s26 = smov 256  }
 0x14a   : > { %s1227_s15 = smov 8  }
 0x14b   : > { %958 = dma.vmem_to_hbm [thread:$0]  (%p1368_p0), %s708_s11, 2048, %s710_s3, %s693_s28, %s1225_s30, %s1226_s26, %s1227_s15  }
 0x14c PF: > { %p964_p4 = scmp.ge.s32.totalorder %s1223_s25, 2  ;;  %s724_s17 = sand.u32 1, %s1171_s12  }
 0x14d   : > { %s725_s20 = scalar_lea.sflag [#allocation5], %s724_s17 }
 0x14e   : > { %p961_p5 = pnand %p964_p4, %p1374_p2 }
 0x150   : > { %p962_p6 = pneg %p961_p5 }
 0x152   : > { %1166 = dma.done.wait (%p962_p6), %s725_s20, 2048  }
 0x153   : > { %1168 = vsyncadd (%p962_p6), %s725_s20, 4294965248  ;;  %s16_s25 = sadd.s32 1, %s1223_s25   ;;  %s1616_s10 = sld [smem:[#allocation9_spill]] }
 0x154   : > { %p1537_p7 = scmp.ge.s32.totalorder %s16_s25, 18   ;;  %s1617_s6 = sld [smem:[#allocation10_spill]] }
 0x155   : > { %s1618_s7 = sld [smem:[#allocation11_spill]]  ;;  %s1621_s12 = smov %s1175_s13 }
 0x156   : > { %s1619_s11 = sld [smem:[#allocation12_spill]]  ;;  %s1622_s13 = smov %s1179_s14 }
 0x157   : > { %s1623_s14 = smov %s1366_s19  ;;  %s1624_s15 = smov %s1187_s16 }
 0x158   : > { %s1625_s16 = smov %s1352_s27  ;;  %s1626_s17 = smov %s1195_s18 }
 0x159   : > { %s1627_s18 = smov %s1363_s21  ;;  %s1628_s19 = smov %s1211_s22 }
 0x15a   : > { %s1629_s20 = smov %s1215_s23  ;;  %s1630_s21 = smov %s1616_s10 }
 0x15b   : > { %s1631_s22 = smov %s1617_s6  ;;  %s1632_s23 = smov %s1618_s7 }
 0x15c   : > { %s1633_s24 = smov %s1619_s11  ;;  %15 = sbr.rel (!%p1537_p7) target bundleno = 13 (0xd), region = 169 }
 0x161   :  { %731 = vsyncpa [#allocation5], 1 }
 0x162   :  { %733 = vsyncpa [#allocation5 + $0x1], 1 }

</bundles_post_ra>
